<compile_context>
chip_gen: v6e
topology: v6e:2x2x1
jax: 0.10.0
libtpu: 0.0.40
codegen_flags: <defaults>
</compile_context>

<pallas_src>
import functools

import jax
import jax.numpy as jnp
from jax.experimental import pallas as pl
from jax.experimental.pallas import tpu as pltpu

EPS = 1e-5


@functools.lru_cache(maxsize=None)
def _roll_direction():
    """Probe pltpu.roll's rotation convention once (robust to either direction).

    Returns +1 if pltpu.roll matches jnp.roll (out[i] = in[(i - shift) % N]),
    otherwise -1.
    """
    def probe(x_ref, o_ref):
        o_ref[...] = pltpu.roll(x_ref[...], 1, axis=1)

    x = jnp.broadcast_to(jnp.arange(128, dtype=jnp.int32), (8, 128))
    y = pl.pallas_call(
        probe, out_shape=jax.ShapeDtypeStruct((8, 128), jnp.int32))(x)
    return 1 if int(y[0, 0]) == 127 else -1


def decoder_block_kernel(x_ref, gmat_ref, mask_ref,
                         g1_ref, b1_ref, w1_ref, cb1_ref,
                         g2_ref, b2_ref, w2_ref, cb2_ref,
                         o_ref, *, C, DHW, taps):
    inv_n = 1.0 / float(DHW)
    x = x_ref[0].astype(jnp.float32)                       # (C, DHW)

    def group_norm(y, gamma, beta):
        # gmat averages channels within a group; the lane reduction finishes the
        # (group x spatial) mean. Intermediates are only 8 vregs in this layout
        # and the gmat matmuls reuse the conv taps' (16,16)@(16,512) shape.
        gy = jnp.dot(gmat_ref[...], y, preferred_element_type=jnp.float32)
        gy2 = jnp.dot(gmat_ref[...], y * y, preferred_element_type=jnp.float32)
        mu = jnp.sum(gy, axis=1, keepdims=True) * inv_n        # (C, 1)
        ex2 = jnp.sum(gy2, axis=1, keepdims=True) * inv_n      # (C, 1)
        var = jnp.maximum(ex2 - mu * mu, 0.0)                  # clamp for safety
        inv = jax.lax.rsqrt(var + EPS)
        return (y - mu) * (inv * gamma) + beta

    def conv3x3x3(act, w_ref, bias):
        # act: (C, DHW). Per tap: lane rotation (XLU) + one precomputed boundary
        # mask multiply (VPU) + a (Cout,Cin)@(Cin,DHW) MXU matmul. The accumulator
        # is C*DHW*4B = 32 KiB = 8 vregs: no spills, no scratch staging buffer.
        acc = None
        for k, (off, shift) in enumerate(taps):
            if off == 0:
                slab = act                                     # center tap: no shift/mask
            else:
                slab = pltpu.roll(act, shift, axis=1) * mask_ref[k]
            term = jnp.dot(w_ref[k], slab, preferred_element_type=jnp.float32)
            acc = term if acc is None else acc + term
        return acc + bias

    h = group_norm(x, g1_ref[...], b1_ref[...])
    h = jnp.maximum(h, 0.0)
    h = conv3x3x3(h, w1_ref, cb1_ref[...])
    h = group_norm(h, g2_ref[...], b2_ref[...])
    h = jnp.maximum(h, 0.0)
    h = conv3x3x3(h, w2_ref, cb2_ref[...])
    # residual: re-read x so it does not have to stay live across the whole body
    o_ref[0] = (h + x_ref[0].astype(jnp.float32)).astype(o_ref.dtype)


def decoder_block(x_ncdhw, params, num_groups=8):
    N, C, D, H, W = x_ncdhw.shape
    DHW = D * H * W
    assert C % num_groups == 0
    assert C % 8 == 0 and DHW % 128 == 0, "need sublane/lane aligned (C, D*H*W)"
    g1, bt1, w1, cb1, g2, bt2, w2, cb2 = params

    # channels-on-sublane, spatial-on-lane: NCDHW -> (N, C, DHW). Pure reshape.
    x = x_ncdhw.reshape(N, C, DHW).astype(jnp.float32)

    cg = C // num_groups
    gidx = jnp.arange(C) // cg
    gmat = (gidx[:, None] == gidx[None, :]).astype(jnp.float32) / cg   # (C, C)

    # 27 conv taps: lane-roll shift + boundary-validity mask. Identical for both
    # convs, every batch element and every grid step, so hoisted out of the kernel.
    rolldir = _roll_direction()
    p = jnp.arange(DHW, dtype=jnp.int32)
    d_i, h_i, w_i = p // (H * W), (p // W) % H, p % W
    taps, masks = [], []
    for kd in range(3):
        for kh in range(3):
            for kw in range(3):
                dd, dh, dw = kd - 1, kh - 1, kw - 1
                off = dd * H * W + dh * W + dw
                taps.append((off, int((-rolldir * off) % DHW)))
                masks.append((d_i + dd >= 0) & (d_i + dd < D) &
                             (h_i + dh >= 0) & (h_i + dh < H) &
                             (w_i + dw >= 0) & (w_i + dw < W))
    masks = jnp.stack(masks).astype(jnp.float32).reshape(27, 1, DHW)

    def tap_mats(w):     # (Cout, Cin, 3, 3, 3) -> (27, Cout, Cin), k = kd*9+kh*3+kw
        return jnp.transpose(w, (2, 3, 4, 0, 1)).reshape(27, C, C).astype(jnp.float32)

    def col(v):          # per-channel vector -> (C, 1) column (broadcasts over lanes)
        return jnp.asarray(v, jnp.float32).reshape(C, 1)

    kernel = functools.partial(decoder_block_kernel, C=C, DHW=DHW, taps=tuple(taps))

    col_spec = pl.BlockSpec((C, 1), lambda n: (0, 0))
    w_spec = pl.BlockSpec((27, C, C), lambda n: (0, 0, 0))
    io_spec = pl.BlockSpec((1, C, DHW), lambda n: (n, 0, 0))

    out = pl.pallas_call(
        kernel,
        out_shape=jax.ShapeDtypeStruct((N, C, DHW), jnp.float32),
        grid_spec=pltpu.PrefetchScalarGridSpec(
            num_scalar_prefetch=0,
            grid=(N,),
            in_specs=[
                io_spec,                                          # x
                pl.BlockSpec((C, C), lambda n: (0, 0)),           # group-average matrix
                pl.BlockSpec((27, 1, DHW), lambda n: (0, 0, 0)),  # boundary masks
                col_spec, col_spec, w_spec, col_spec,             # norm1 / conv1
                col_spec, col_spec, w_spec, col_spec,             # norm2 / conv2
            ],
            out_specs=io_spec,
        ),
        compiler_params=pltpu.CompilerParams(
            # batch blocks are fully independent -> parallel (v7x two TensorCores)
            dimension_semantics=("parallel",)),
    )(x, gmat, masks,
      col(g1), col(bt1), tap_mats(w1), col(cb1),
      col(g2), col(bt2), tap_mats(w2), col(cb2))

    return out.reshape(N, C, D, H, W)


def reference(x_ncdhw, params, num_groups=8):
    """Pure-JAX reference matching nn.GroupNorm / nn.Conv3d semantics."""
    g1, bt1, w1, cb1, g2, bt2, w2, cb2 = params
    N, C, D, H, W = x_ncdhw.shape

    def gn(y, gamma, beta):
        cg = C // num_groups
        yr = y.reshape(N, num_groups, cg, D, H, W)
        mu = yr.mean(axis=(2, 3, 4, 5), keepdims=True)
        var = ((yr - mu) ** 2).mean(axis=(2, 3, 4, 5), keepdims=True)
        z = ((yr - mu) / jnp.sqrt(var + EPS)).reshape(N, C, D, H, W)
        return z * gamma.reshape(1, C, 1, 1, 1) + beta.reshape(1, C, 1, 1, 1)

    def conv(y, w, b):
        z = jax.lax.conv_general_dilated(
            y, w, window_strides=(1, 1, 1), padding=((1, 1),) * 3,
            dimension_numbers=("NCDHW", "OIDHW", "NCDHW"),
            precision=jax.lax.Precision.HIGHEST)
        return z + b.reshape(1, C, 1, 1, 1)

    out = gn(x_ncdhw, g1, bt1)
    out = jax.nn.relu(out)
    out = conv(out, w1, cb1)
    out = gn(out, g2, bt2)
    out = jax.nn.relu(out)
    out = conv(out, w2, cb2)
    return out + x_ncdhw


if __name__ == "__main__":
    N, C, D, H, W = 2, 16, 8, 8, 8    # inChans == outChans == 16, num_groups=8
    key = jax.random.PRNGKey(0)
    ks = jax.random.split(key, 9)

    x = jax.random.normal(ks[0], (N, C, D, H, W), jnp.float32)

    wscale = 1.0 / (27 * C) ** 0.5
    params = (
        1.0 + 0.1 * jax.random.normal(ks[1], (C,), jnp.float32),          # norm1 gamma
        0.1 * jax.random.normal(ks[2], (C,), jnp.float32),                # norm1 beta
        wscale * jax.random.normal(ks[3], (C, C, 3, 3, 3), jnp.float32),  # conv1 weight (OIDHW)
        0.1 * jax.random.normal(ks[4], (C,), jnp.float32),                # conv1 bias
        1.0 + 0.1 * jax.random.normal(ks[5], (C,), jnp.float32),          # norm2 gamma
        0.1 * jax.random.normal(ks[6], (C,), jnp.float32),                # norm2 beta
        wscale * jax.random.normal(ks[7], (C, C, 3, 3, 3), jnp.float32),  # conv2 weight (OIDHW)
        0.1 * jax.random.normal(ks[8], (C,), jnp.float32),                # conv2 bias
    )

    out = jax.block_until_ready(decoder_block(x, params))
    ref = jax.block_until_ready(reference(x, params))

    assert out.shape == (N, C, D, H, W)
    max_err = float(jnp.max(jnp.abs(out - ref)))
    assert max_err < 1e-2, f"mismatch vs reference, max_err={max_err}"
    print("KERNEL_OK")
</pallas_src>

<mosaic_0001>
module attributes {stable_mosaic.version = 11 : i64} {
  func.func @probe(%arg0: memref<8x128xi32, #tpu.memory_space<vmem>>, %arg1: memref<8x128xi32, #tpu.memory_space<vmem>>) attributes {dimension_semantics = [], scalar_prefetch = 0 : i64, scratch_operands = 0 : i64, tpu.core_type = #tpu.core_type<tc>} {
    %c0 = arith.constant 0 : index
    %c0_0 = arith.constant 0 : index
    %0 = vector.load %arg0[%c0, %c0_0] : memref<8x128xi32, #tpu.memory_space<vmem>>, vector<8x128xi32>
    %c1_i32 = arith.constant 1 : i32
    %1 = tpu.dynamic_rotate %0 by %c1_i32 dim 1 : vector<8x128xi32>, i32 -> vector<8x128xi32>
    %c0_1 = arith.constant 0 : index
    %c0_2 = arith.constant 0 : index
    %2 = vector.load %arg1[%c0_1, %c0_2] : memref<8x128xi32, #tpu.memory_space<vmem>>, vector<8x128xi32>
    tpu.vector_store %arg1[%c0_1, %c0_2], %1 {strides = array<i32>} : memref<8x128xi32, #tpu.memory_space<vmem>>, vector<8x128xi32>,
    return
  }
}

</mosaic_0001>

<bundles_post_ra>
// kernel: tpu_custom_call.1
= control target key start
LH: loop header
LB: loop body
LE: loop exit
PB: predicated region body
PF: predicated region fallthrough
CT: control target
= control target key end

     0   :  { %6 = vsyncpa [#allocation3], 0  ;;  %s106_s0 = inlined_call_operand.hbm [shape: s32[8,128], index: 0, kind: input, shape index: {}]   ;;  %s107_s1 = inlined_call_operand.hbm [shape: s32[8,128], index: 1, kind: output, shape index: {}]  }
   0x1   :  { %7 = vsyncpa [#allocation4], 0  ;;  %s87_s6 = smov [#allocation2]  }
   0x2   :  { %s14_s7 = sshll.u32 %s87_s6, 4  ;;  %s15_s7 = int_to_ptr.vmem [resolvable:$true] %s14_s7 }
   0x3   :  { %s51_s8 = scalar_lea.vmem %s15_s7, 128  ;;  %p56_p1 = scmp.lt.s32.totalorder %s15_s7, %s15_s7 }
   0x4   :  { %p52_p0 = scmp.ne.s32.totalorder %s15_s7, %s51_s8  ;;  %p57_p2 = scmp.lt.s32.totalorder %s51_s8, %s51_s8 }
   0x6   :  { %p58_p3 = por %p57_p2, %p56_p1 }
   0x8   :  { %p59_p4 = pnand %p58_p3, %p52_p0 }
   0xa   :  { %62 = shalt.err (!%p59_p4)
}
   0xb   :  { %17 = dma.hbm_to_vmem [thread:$0]  %s106_s0, 128, %s15_s7, [#allocation3]  }
   0xc   :  { %83 = dma.done.wait [#allocation3], 128  }
   0xd   :  { %84 = vsyncadd [#allocation3], 4294967168  ;;  %v21_v0 = vld [vmem:[#allocation2] sm:$0xff]  ;;  %s88_s11 = smov 1   ;;  %s89_s12 = smov [#allocation5]  }
   0xe   :  { %22 = vrot.lane.b32.xlu0 %v21_v0, %s88_s11  ;;  %s31_s13 = sshll.u32 %s89_s12, 4  ;;  %s32_s13 = int_to_ptr.vmem [resolvable:$true] %s31_s13 }
   0xf   :  { %s63_s14 = scalar_lea.vmem %s32_s13, 128  ;;  %p68_p6 = scmp.lt.s32.totalorder %s32_s13, %s32_s13 }
  0x10   :  { %p64_p5 = scmp.ne.s32.totalorder %s32_s13, %s63_s14  ;;  %p69_p7 = scmp.lt.s32.totalorder %s63_s14, %s63_s14 }
  0x12   :  { %p70_p8 = por %p69_p7, %p68_p6 }
  0x14   :  { %p71_p9 = pnand %p70_p8, %p64_p5 }
  0x80   :  { %v23_v1 = vpop.permute.xlu0 %22 }
  0x81   :  { %24 = vst [vmem:[#allocation5] sm:$0xff] %v23_v1 }
  0x82   :  { %74 = shalt.err (!%p71_p9)
}
  0x83   :  { %34 = dma.vmem_to_hbm [thread:$0]  %s32_s13, 128, %s107_s1, [#allocation4]  }
  0x84   :  { %85 = dma.done.wait [#allocation4], 128  }
  0x85   :  { %86 = vsyncadd [#allocation4], 4294967168 }
  0x86   :  { %38 = vsyncpa [#allocation3], 1 }
  0x87   :  { %39 = vsyncpa [#allocation4], 1 }

</bundles_post_ra>
